<compile_context>
chip_gen: v6e
topology: v6e:2x2x1
jax: 0.10.0
libtpu: 0.0.40
codegen_flags: <defaults>
</compile_context>

<pallas_src>
import functools

import jax
import jax.numpy as jnp
from jax.experimental import pallas as pl
from jax.experimental.pallas import tpu as pltpu


def _dd_kernel(x_ref, w1_ref, b1_ref, w2t_ref, b2_ref, o_ref, *, matmul_dtype):
    # grad_reverse is identity in the forward pass -> nothing to do.
    x = x_ref[...].astype(matmul_dtype)            # (TILE_B, D_in)
    w1 = w1_ref[...].astype(matmul_dtype)          # (D_in, H)

    # Layer 1 on the MXU (bf16 operands, f32 accumulate); bias + ReLU in f32.
    h = jnp.dot(x, w1, preferred_element_type=jnp.float32)            # (TILE_B, H)
    h = jnp.maximum(h + b1_ref[...].astype(jnp.float32), 0.0)

    # Layer 2, lane-dense: contract the H axis of (1, H) against the H axis of
    # (TILE_B, H) -> (1, TILE_B).  Batch lands on the 128-lane axis so the
    # output is a contiguous unmasked (1, TILE_B) slab (no (B,1) partial vst).
    logit = jax.lax.dot_general(
        w2t_ref[...].astype(matmul_dtype), h.astype(matmul_dtype),
        dimension_numbers=(((1,), (1,)), ((), ())),
        preferred_element_type=jnp.float32)                            # (1, TILE_B)
    logit = logit + b2_ref[...].astype(jnp.float32)

    o_ref[...] = jax.nn.sigmoid(logit).astype(o_ref.dtype)


def _round_up(v, m):
    return ((v + m - 1) // m) * m


def domain_discriminator_forward(x, w1, b1, w2, b2, scale=1.0, *,
                                 tile_b=16384, matmul_dtype=jnp.bfloat16):
    """Forward pass of `domain_discriminator` as a batch-tiled Pallas kernel.

    x  : (B, input_dim)   (bf16 x is accepted and recommended for large B)
    w1 : (input_dim, hidden_dim), b1 : (hidden_dim,)
    w2 : (hidden_dim, 1),         b2 : (1,)
    `scale` only affects grad_reverse's backward pass; unused in forward.
    Returns (B, 1) float32, matching the PyTorch module.
    """
    del scale  # identity in forward
    B, d_in = x.shape
    h_dim = w1.shape[1]

    # ---- batch tiling (no host-side padding; partial tail tile is fine) ----
    if B <= tile_b:
        if B >= 2048:
            # Split so the "parallel" grid axis can shard across TensorCores.
            tb = _round_up(pl.cdiv(B, 2), 128)
        else:
            tb = B        # single full-extent block: no (8,128) alignment needed
    else:
        tb = _round_up(min(tile_b, pl.cdiv(B, 2)), 128)
    num_tiles = pl.cdiv(B, tb)

    # ---- VMEM budget: double-buffered x tile is lane-padded (tb,32)->(tb,128)
    itemsize = x.dtype.itemsize
    x_block_vmem = tb * 128 * itemsize
    out_block_vmem = 8 * tb * 4
    vmem_limit = int(min(max(2 * (x_block_vmem + out_block_vmem) + (4 << 20),
                             32 << 20),
                         64 << 20))

    b1_2d = b1.reshape(1, h_dim)
    w2_t = w2.reshape(1, h_dim)        # (H, 1) -> (1, H)
    b2_2d = b2.reshape(1, 1)

    cost = pl.CostEstimate(
        flops=2 * B * h_dim * (d_in + 1),
        transcendentals=B,                                    # sigmoid exp
        bytes_accessed=B * d_in * itemsize + B * 4 + (d_in + 3) * h_dim * 4 + 4)

    kernel = functools.partial(_dd_kernel, matmul_dtype=matmul_dtype)

    out_row = pl.pallas_call(
        kernel,
        out_shape=jax.ShapeDtypeStruct((1, B), jnp.float32),
        grid=(num_tiles,),
        in_specs=[
            pl.BlockSpec((tb, d_in), lambda i: (i, 0)),      # x: pipelined tiles
            pl.BlockSpec((d_in, h_dim), lambda i: (0, 0)),   # W1: VMEM-resident
            pl.BlockSpec((1, h_dim), lambda i: (0, 0)),      # b1: resident
            pl.BlockSpec((1, h_dim), lambda i: (0, 0)),      # W2^T: resident
            pl.BlockSpec((1, 1), lambda i: (0, 0)),          # b2: resident
        ],
        out_specs=pl.BlockSpec((1, tb), lambda i: (0, i)),   # lane-dense output
        compiler_params=pltpu.CompilerParams(
            dimension_semantics=("parallel",),
            vmem_limit_bytes=vmem_limit),
        cost_estimate=cost,
    )(x, w1, b1_2d, w2_t, b2_2d)

    # (1, B) lane-dense kernel output -> (B, 1) module output (trivial reshape).
    return out_row.reshape(B, 1)


def _reference(x, w1, b1, w2, b2):
    h = jnp.maximum(x.astype(jnp.float32) @ w1 + b1, 0.0)
    return jax.nn.sigmoid(h @ w2 + b2)


def _init_params(key, input_dim=32, hidden_dim=16):
    """Deterministic init mimicking nn.Linear's U(-1/sqrt(fan_in), 1/sqrt(fan_in))."""
    k1, k2, k3, k4 = jax.random.split(key, 4)
    lim1 = 1.0 / jnp.sqrt(jnp.float32(input_dim))
    lim2 = 1.0 / jnp.sqrt(jnp.float32(hidden_dim))
    w1 = jax.random.uniform(k1, (input_dim, hidden_dim), jnp.float32, -lim1, lim1)
    b1 = jax.random.uniform(k2, (hidden_dim,), jnp.float32, -lim1, lim1)
    w2 = jax.random.uniform(k3, (hidden_dim, 1), jnp.float32, -lim2, lim2)
    b2 = jax.random.uniform(k4, (1,), jnp.float32, -lim2, lim2)
    return w1, b1, w2, b2


if __name__ == "__main__":
    key = jax.random.PRNGKey(0)
    k_x, k_p, k_x2 = jax.random.split(key, 3)

    B, INPUT_DIM, HIDDEN_DIM = 8, 32, 16
    x = jax.random.normal(k_x, (B, INPUT_DIM), jnp.float32)
    w1, b1, w2, b2 = _init_params(k_p, INPUT_DIM, HIDDEN_DIM)

    # 1) Small batch, single full-extent tile, exact f32 matmul path.
    out = domain_discriminator_forward(x, w1, b1, w2, b2, scale=1.0,
                                       matmul_dtype=jnp.float32)
    out = jax.block_until_ready(out)
    ref = _reference(x, w1, b1, w2, b2)
    assert out.shape == (B, 1)
    assert jnp.allclose(out, ref, atol=1e-5, rtol=1e-5)

    # 2) Multi-tile grid with an unaligned, partial last tile (no host padding),
    #    default bf16 MXU operands (f32 accumulate) -> looser tolerance.
    B2 = 300
    x2 = jax.random.normal(k_x2, (B2, INPUT_DIM), jnp.float32)
    out2 = domain_discriminator_forward(x2, w1, b1, w2, b2, scale=1.0, tile_b=128)
    out2 = jax.block_until_ready(out2)
    ref2 = _reference(x2, w1, b1, w2, b2)
    assert out2.shape == (B2, 1)
    assert jnp.allclose(out2, ref2, atol=5e-3, rtol=5e-3)

    # 3) bf16 input from the caller (halves HBM traffic; no wrapper-side cast).
    x2_bf16 = x2.astype(jnp.bfloat16)
    out3 = domain_discriminator_forward(x2_bf16, w1, b1, w2, b2, tile_b=128)
    out3 = jax.block_until_ready(out3)
    ref3 = _reference(x2_bf16, w1, b1, w2, b2)
    assert out3.shape == (B2, 1)
    assert jnp.allclose(out3, ref3, atol=5e-3, rtol=5e-3)

    print("KERNEL_OK")
</pallas_src>

<mosaic_0001>
module attributes {stable_mosaic.version = 11 : i64} {
  func.func @_dd_kernel(%arg0: i32, %arg1: memref<8x32xf32, #tpu.memory_space<vmem>>, %arg2: memref<32x16xf32, #tpu.memory_space<vmem>>, %arg3: memref<1x16xf32, #tpu.memory_space<vmem>>, %arg4: memref<1x16xf32, #tpu.memory_space<vmem>>, %arg5: memref<1x1xf32, #tpu.memory_space<vmem>>, %arg6: memref<1x8xf32, #tpu.memory_space<vmem>>) attributes {dimension_semantics = [#tpu.dimension_semantics<parallel>], iteration_bounds = array<i64: 1>, scalar_prefetch = 0 : i64, scratch_operands = 0 : i64, tpu.core_type = #tpu.core_type<tc>, window_params = [{transform_indices = @transform_0, window_bounds = array<i64: 8, 32>}, {pipeline_mode = #tpu.pipeline_mode<synchronous>, transform_indices = @transform_1, window_bounds = array<i64: 32, 16>}, {pipeline_mode = #tpu.pipeline_mode<synchronous>, transform_indices = @transform_2, window_bounds = array<i64: 1, 16>}, {pipeline_mode = #tpu.pipeline_mode<synchronous>, transform_indices = @transform_3, window_bounds = array<i64: 1, 16>}, {pipeline_mode = #tpu.pipeline_mode<synchronous>, transform_indices = @transform_4, window_bounds = array<i64: 1, 1>}, {transform_indices = @transform_5, window_bounds = array<i64: 1, 8>}]} {
    %c0 = arith.constant 0 : index
    %c0_0 = arith.constant 0 : index
    %0 = vector.load %arg1[%c0, %c0_0] : memref<8x32xf32, #tpu.memory_space<vmem>>, vector<8x32xf32>
    %c0_1 = arith.constant 0 : index
    %c0_2 = arith.constant 0 : index
    %1 = vector.load %arg2[%c0_1, %c0_2] : memref<32x16xf32, #tpu.memory_space<vmem>>, vector<32x16xf32>
    %cst = arith.constant dense<0.000000e+00> : vector<8x16xf32>
    %2 = tpu.matmul %0, %1, %cst {dimension_numbers = #tpu.dot_dimension_numbers<[1], [0], [0], [1], [0, 0, 1, 1], [], []>} : vector<8x32xf32>, vector<32x16xf32>, vector<8x16xf32> -> vector<8x16xf32>
    %c0_3 = arith.constant 0 : index
    %c0_4 = arith.constant 0 : index
    %3 = vector.load %arg3[%c0_3, %c0_4] : memref<1x16xf32, #tpu.memory_space<vmem>>, vector<1x16xf32>
    %4 = vector.broadcast %3 : vector<1x16xf32> to vector<8x16xf32>
    %5 = arith.addf %2, %4 : vector<8x16xf32>
    %cst_5 = arith.constant 0.000000e+00 : f32
    %6 = vector.broadcast %cst_5 : f32 to vector<8x16xf32>
    %7 = arith.maximumf %5, %6 : vector<8x16xf32>
    %c0_6 = arith.constant 0 : index
    %c0_7 = arith.constant 0 : index
    %8 = vector.load %arg4[%c0_6, %c0_7] : memref<1x16xf32, #tpu.memory_space<vmem>>, vector<1x16xf32>
    %cst_8 = arith.constant dense<0.000000e+00> : vector<1x8xf32>
    %9 = tpu.matmul %8, %7, %cst_8 {dimension_numbers = #tpu.dot_dimension_numbers<[1], [1], [0], [0], [0, 0, 1, 0], [], []>} : vector<1x16xf32>, vector<8x16xf32>, vector<1x8xf32> -> vector<1x8xf32>
    %c0_9 = arith.constant 0 : index
    %c0_10 = arith.constant 0 : index
    %10 = vector.load %arg5[%c0_9, %c0_10] : memref<1x1xf32, #tpu.memory_space<vmem>>, vector<1x1xf32>
    %11 = vector.broadcast %10 : vector<1x1xf32> to vector<1x8xf32>
    %12 = arith.addf %9, %11 : vector<1x8xf32>
    %13 = arith.negf %12 : vector<1x8xf32>
    %14 = math.exp %13 : vector<1x8xf32>
    %cst_11 = arith.constant 1.000000e+00 : f32
    %15 = vector.broadcast %cst_11 : f32 to vector<1x8xf32>
    %16 = arith.addf %15, %14 : vector<1x8xf32>
    %17 = arith.divf %15, %16 : vector<1x8xf32>
    %c0_12 = arith.constant 0 : index
    %c0_13 = arith.constant 0 : index
    %18 = vector.load %arg6[%c0_12, %c0_13] : memref<1x8xf32, #tpu.memory_space<vmem>>, vector<1x8xf32>
    tpu.vector_store %arg6[%c0_12, %c0_13], %17 {strides = array<i32>} : memref<1x8xf32, #tpu.memory_space<vmem>>, vector<1x8xf32>,
    return
  }
  func.func @transform_0(%arg0: i32) -> (i32, i32) {
    %c0_i32 = arith.constant 0 : i32
    %c0_i32_0 = arith.constant 0 : i32
    return %arg0, %c0_i32 : i32, i32
  }
  func.func @transform_1(%arg0: i32) -> (i32, i32) {
    %c0_i32 = arith.constant 0 : i32
    %c0_i32_0 = arith.constant 0 : i32
    %c0_i32_1 = arith.constant 0 : i32
    return %c0_i32, %c0_i32_0 : i32, i32
  }
  func.func @transform_2(%arg0: i32) -> (i32, i32) {
    %c0_i32 = arith.constant 0 : i32
    %c0_i32_0 = arith.constant 0 : i32
    %c0_i32_1 = arith.constant 0 : i32
    return %c0_i32, %c0_i32_0 : i32, i32
  }
  func.func @transform_3(%arg0: i32) -> (i32, i32) {
    %c0_i32 = arith.constant 0 : i32
    %c0_i32_0 = arith.constant 0 : i32
    %c0_i32_1 = arith.constant 0 : i32
    return %c0_i32, %c0_i32_0 : i32, i32
  }
  func.func @transform_4(%arg0: i32) -> (i32, i32) {
    %c0_i32 = arith.constant 0 : i32
    %c0_i32_0 = arith.constant 0 : i32
    %c0_i32_1 = arith.constant 0 : i32
    return %c0_i32, %c0_i32_0 : i32, i32
  }
  func.func @transform_5(%arg0: i32) -> (i32, i32) {
    %c0_i32 = arith.constant 0 : i32
    %c0_i32_0 = arith.constant 0 : i32
    return %c0_i32, %arg0 : i32, i32
  }
}

</mosaic_0001>

<bundles_post_ra>
// kernel: tpu_custom_call.1
= control target key start
LH: loop header
LB: loop body
LE: loop exit
PB: predicated region body
PF: predicated region fallthrough
CT: control target
= control target key end

     0   :  { %s340_s0 = inlined_call_operand.vmem [shape: f32[8,32], index: 0, kind: input, shape index: {}]   ;;  %s341_s1 = inlined_call_operand.vmem [shape: f32[32,16], index: 1, kind: input, shape index: {}]   ;;  %s342_s2 = inlined_call_operand.vmem [shape: f32[1,16], index: 2, kind: input, shape index: {}]   ;;  %s343_s3 = inlined_call_operand.vmem [shape: f32[1,16], index: 3, kind: input, shape index: {}]   ;;  %s344_s4 = inlined_call_operand.<no memory space> [shape: f32[1,1], index: 4, kind: input, shape index: {}]   ;;  %s345_s5 = inlined_call_operand.hbm [shape: f32[1,8], index: 5, kind: output, shape index: {}]  }
   0x1   :  { %v10_v0 = vstv %s344_s4 }
   0x2   :  { %11 = vst [vmem:[#allocation2] sm:$0x1] %v10_v0 }
   0x3   :  { %v27_v1 = vld [vmem:[%s341_s1 + $0x18] sm:$0xff]  ;;  %v279_v2 = vmov 0.0   ;;  %v26_v3 = vld [vmem:[%s341_s1 + $0x10] sm:$0xff]  ;;  %vm280_vm0 = vmmov 0  }
   0x4   :  { %232 = vmatprep.subr.mxu0 %v279_v2  ;;  %240 = vmatprep.mubr.msk.f32.mxu0 %vm280_vm0, %v279_v2 }
   0x5   :  { %233 = vmatpush3.msra.mxu0 %v27_v1  ;;  %243 = vmatprep.subr.mxu1 %v279_v2 }
   0x6   :  { %12 = vsyncpa [#allocation4], 0  ;;  %234 = vmatprep.subr.mxu0 %v279_v2  ;;  %v25_v4 = vld [vmem:[%s341_s1 + $0x8] sm:$0xff]  ;;  %245 = vmatprep.mubr.msk.f32.mxu1 %vm280_vm0, %v279_v2  ;;  %v24_v5 = vld [vmem:[%s341_s1] sm:$0xff]  ;;  %vm35_vm1 = vcmask 261120   ;;  %v281_v8 = vmov 0   ;;  %v117_v15 = vlaneseq }
   0x7   :  { %235 = vmatpush3.msra.mxu0 %v26_v3  ;;  %v23_v6 = vld [vmem:[%s340_s0] sm:$0xff]  ;;  %252 = vset.pattern.permute.xlu0 %v281_v8  ;;  %vm121_vm2 = vcmask 130048   ;;  %vm204_vm3 = vcmask 57344  }
   0x8   :  { %236 = vmatprep.subr.mxu0 %v279_v2  ;;  %v220_v9 = vld [vmem:[%s342_s2] ss:$0 sm:$0xff]  ;;  %v118_v16 = vshrl.u32 %v117_v15, 7  ;;  %s282_s2 = smov [#allocation3]  }
   0x9   :  { %237 = vmatpush3.msra.mxu0 %v25_v4  ;;  %v111_v7 = vld [vmem:[#allocation2] sm:$0x1]  ;;  %s212_s6 = sshll.u32 %s282_s2, 4  ;;  %s213_s6 = int_to_ptr.vmem [resolvable:$true] %s212_s6 }
   0xa   :  { %238 = vmatprep.subr.mxu0 %v279_v2  ;;  %114 = vperm.xlu0 %252, %v111_v7   ;;  %v110_v14 = vld [vmem:[%s343_s3] sm:$0x1]  ;;  %v119_v17 = vsub.s32 0, %v118_v16  ;;  %s257_s3 = scalar_lea.vmem %s213_s6, 16  ;;  %s261_s7 = scalar_lea.vmem %s213_s6, 32 }
   0xb   :  { %239 = vmatpush3.msra.mxu0 %v24_v5  ;;  %p258_p0 = scmp.ne.s32.totalorder %s213_s6, %s257_s3  ;;  %p262_p1 = scmp.lt.s32.totalorder %s213_s6, %s213_s6 }
   0xc   :  { %241 = vmatmul.mubr.msk.f32.vlgmr.msra.gmra.mxu0 %vm35_vm1, %v23_v6  ;;  %p263_p2 = scmp.lt.s32.totalorder %s261_s7, %s257_s3 }
   0xe   :  { %p264_p3 = por %p263_p2, %p262_p1 }
  0x10   :  { %p265_p4 = pnand %p264_p3, %p258_p0 }
  0x85   :  { %v115_v18 = vpop.permute.xlu0 %114 }
  0x86   :  { %v120_v19 = vrot.slane %v115_v18, %v119_v17 }
  0xcc   :  { %v105_v10 = vpop.f32.mrf.mxu0 }
  0xcd   :  { %v106_v11 = vadd.f32 %v220_v9, %v105_v10 }
  0xce   :  { %v242_v12 = vpop.f32.mrf.mxu0 }
  0xcf   :  { %v109_v13 = vmax.f32 %v106_v11, 0.0 }
  0xd1   :  { %244 = vmatpush3.xpose.msk.msra.mxu1 %vm121_vm2, %v109_v13 }
  0xd4   :  { %246 = vmatmul.mubr.msk.f32.vlgmr.msra.gmra.mxu1 %vm121_vm2, %v110_v14 }
 0x194   :  { %v194_v20 = vpop.f32.mrf.mxu1 }
 0x195   :  { %v195_v21 = vadd.f32 %v194_v20, %v120_v19 }
 0x196   :  { %v247_v22 = vpop.f32.mrf.mxu1 }
 0x197   :  { %v224_v23 = vmul.f32 -1.442695, %v195_v21 }
 0x199   :  { %253 = vpow2.f32 %v224_v23 }
 0x1a6   :  { %v254_v24 = vpop.eup %253 }
 0x1a7   :  { %v201_v25 = vadd.f32 1.0, %v254_v24 }
 0x1a9   :  { %255 = vrcp.f32 %v201_v25 }
 0x1b6   :  { %v256_v26 = vpop.eup %255 }
 0x1b7   :  { %205 = vst.msk [vmem:[#allocation3] sm:$0x1] %vm204_vm3, %v256_v26 }
 0x1b8   :  { %268 = shalt.err (!%p265_p4)
}
 0x1b9   :  { %215 = dma.vmem_to_hbm [thread:$0]  %s213_s6, 16, %s345_s5, [#allocation4]  }
 0x1ba   :  { %277 = dma.done.wait [#allocation4], 16  }
 0x1bb   :  { %278 = vsyncadd [#allocation4], 4294967280 }
 0x1bc   :  { %219 = vsyncpa [#allocation4], 1 }

</bundles_post_ra>
